<compile_context>
chip_gen: v7x
topology: tpu7x:2x2x1
jax: 0.10.0
libtpu: 0.0.40
codegen_flags: <defaults>
</compile_context>

<pallas_src>
import functools

import jax
import jax.numpy as jnp
import numpy as np
from jax.experimental import pallas as pl
from jax.experimental.pallas import tpu as pltpu


def _mha_kernel(q_ref, k_ref, v_ref, wq_ref, wk_ref, wv_ref, wfc_ref,
                out_ref, acc_ref, *, bt, lq, lk):
    """One grid step = (one batch tile, one head).  All matmuls are 2-D
    (batch rows folded into M) except the block-diagonal attention core,
    which is a leading-batch 3-D einsum over the batch tile."""
    h = pl.program_id(1)
    dim_k = q_ref.shape[-1]
    dim_v = v_ref.shape[-1]

    # Flatten the batch tile into the MXU M dimension (lane dim unchanged).
    q2 = q_ref[...].reshape(bt * lq, dim_k)           # (Bt*Lq, dim_k) bf16
    k2 = k_ref[...].reshape(bt * lk, dim_k)           # (Bt*Lk, dim_k) bf16
    v2 = v_ref[...].reshape(bt * lk, dim_v)           # (Bt*Lk, dim_v) bf16

    # Per-head projections: single 2-D matmuls, f32 accumulation, eager bf16
    # narrowing so no f32 copies are live across the softmax.  The 1/sqrt(d_k)
    # scale is pre-folded into wq in the wrapper.
    qh = jnp.dot(q2, wq_ref[0],
                 preferred_element_type=jnp.float32).astype(jnp.bfloat16)
    kh = jnp.dot(k2, wk_ref[0],
                 preferred_element_type=jnp.float32).astype(jnp.bfloat16)
    vh = jnp.dot(v2, wv_ref[0],
                 preferred_element_type=jnp.float32).astype(jnp.bfloat16)

    d_k = qh.shape[-1]
    d_v = vh.shape[-1]
    # Re-expose the batch tile so attention stays block-diagonal over batch.
    qh3 = qh.reshape(bt, lq, d_k)
    kh3 = kh.reshape(bt, lk, d_k)
    vh3 = vh.reshape(bt, lk, d_v)

    # Scores (contraction over the last dims, no explicit transpose).
    s = jnp.einsum("bqd,bkd->bqk", qh3, kh3,
                   preferred_element_type=jnp.float32)       # (Bt, Lq, Lk) f32

    # Softmax in f32; normalizer via EUP approx reciprocal (free slot).
    m = jnp.max(s, axis=-1, keepdims=True)
    e = jnp.exp(s - m)
    denom = jnp.sum(e, axis=-1, keepdims=True)
    attn = (e * pl.reciprocal(denom, approx=True)).astype(jnp.bfloat16)
    # TODO(synk): optional `mask` argument (masked_fill with -inf *before* the
    # row max) not wired in; the module's default forward uses mask=None.
    # Dropout layers = eval-mode identity.

    oh = jnp.einsum("bqk,bkd->bqd", attn, vh3,
                    preferred_element_type=jnp.float32)      # (Bt, Lq, d_v)

    # Per-head slice of the output projection; the head-concat + fc matmul of
    # the PyTorch module becomes a sum over heads of (oh_h @ Wfc_h), which is
    # accumulated across the head grid axis in a resident f32 scratch.
    fc = jnp.dot(oh.reshape(bt * lq, d_v).astype(jnp.bfloat16), wfc_ref[0],
                 preferred_element_type=jnp.float32)         # (Bt*Lq, d_model)

    @pl.when(h == 0)
    def _():
        acc_ref[...] = jnp.zeros_like(acc_ref)

    acc_ref[...] += fc

    @pl.when(h == pl.num_programs(1) - 1)
    def _():
        out_ref[...] = acc_ref[...].reshape(out_ref.shape).astype(out_ref.dtype)


def multi_head_attention(q, k, v, wq, wk, wv, wfc, *, n_head, d_k, d_v,
                         batch_tile=None):
    """q: (B, Lq, n_head*d_k); k: (B, Lk, n_head*d_k); v: (B, Lk, n_head*d_v)
    wq/wk/wv: (dim, dim) pre-transposed (x @ W); wfc: (n_head*d_v, d_model)."""
    B, Lq, dim_k = q.shape
    _, Lk, dim_v = v.shape
    d_model = wfc.shape[1]

    bf16 = jnp.bfloat16
    # One-time weight transforms (per review: a weight transform, not an
    # activation pre-scale): fold 1/sqrt(d_k) into Wq, split weights per head
    # with a leading head axis, cast MXU operands to bf16.
    scale = 1.0 / float(d_k) ** 0.5
    wq3 = (wq * scale).reshape(dim_k, n_head, d_k).transpose(1, 0, 2).astype(bf16)
    wk3 = wk.reshape(dim_k, n_head, d_k).transpose(1, 0, 2).astype(bf16)
    wv3 = wv.reshape(dim_v, n_head, d_v).transpose(1, 0, 2).astype(bf16)
    wfc3 = wfc.reshape(n_head, d_v, d_model).astype(bf16)
    qb, kb, vb = q.astype(bf16), k.astype(bf16), v.astype(bf16)

    # Batch tile: fold batch rows into the matmul M dimension (target >=128
    # rows per tile where the batch allows it).  At B=2, Lq=8 the whole batch
    # is a single tile / single step over the batch axis.
    if batch_tile is None:
        target = max(1, min(B, -(-128 // max(Lq, 1))))
        batch_tile = next(bt for bt in range(target, 0, -1) if B % bt == 0)
    bt = batch_tile
    assert B % bt == 0

    kernel = functools.partial(_mha_kernel, bt=bt, lq=Lq, lk=Lk)

    grid_spec = pltpu.PrefetchScalarGridSpec(
        num_scalar_prefetch=0,
        grid=(B // bt, n_head),                      # head axis = reduction, last
        in_specs=[
            pl.BlockSpec((bt, Lq, dim_k), lambda b, h: (b, 0, 0)),
            pl.BlockSpec((bt, Lk, dim_k), lambda b, h: (b, 0, 0)),
            pl.BlockSpec((bt, Lk, dim_v), lambda b, h: (b, 0, 0)),
            pl.BlockSpec((1, dim_k, d_k), lambda b, h: (h, 0, 0)),
            pl.BlockSpec((1, dim_k, d_k), lambda b, h: (h, 0, 0)),
            pl.BlockSpec((1, dim_v, d_v), lambda b, h: (h, 0, 0)),
            pl.BlockSpec((1, d_v, d_model), lambda b, h: (h, 0, 0)),
        ],
        out_specs=pl.BlockSpec((bt, Lq, d_model), lambda b, h: (b, 0, 0)),
        scratch_shapes=[pltpu.VMEM((bt * Lq, d_model), jnp.float32)],
    )

    flops = 2 * B * (Lq * dim_k * dim_k + Lk * dim_k * dim_k
                     + Lk * dim_v * dim_v
                     + n_head * Lq * Lk * (d_k + d_v)
                     + Lq * dim_v * d_model)
    bytes_accessed = (2 * (qb.size + kb.size + vb.size)
                      + 2 * (B // bt) * (wq3.size + wk3.size + wv3.size
                                         + wfc3.size)
                      + 4 * B * Lq * d_model)
    cost = pl.CostEstimate(flops=int(flops),
                           transcendentals=int(B * n_head * Lq * Lk),
                           bytes_accessed=int(bytes_accessed))

    # Output dtype is f32 for parity with the module; for v5e writeback
    # bandwidth a bf16 out_shape works unchanged (the accumulator stays f32).
    out = pl.pallas_call(
        kernel,
        out_shape=jax.ShapeDtypeStruct((B, Lq, d_model), jnp.float32),
        grid_spec=grid_spec,
        compiler_params=pltpu.CompilerParams(
            dimension_semantics=("parallel", "arbitrary")),
        cost_estimate=cost,
    )(qb, kb, vb, wq3, wk3, wv3, wfc3)

    # TODO(synk): for production shapes add a parallel Lq axis (feeds both
    # v7x TensorCores) and a KV grid axis with online softmax so the f32
    # score tile + double-buffered blocks fit v7x's 64 MiB VMEM.
    return out


def _reference(q, k, v, wq, wk, wv, wfc, *, n_head, d_k, d_v):
    """Pure-JAX f32 reference mirroring the PyTorch forward (eval mode)."""
    B, Lq, _ = q.shape
    _, Lk, _ = k.shape
    qp = (q @ wq).reshape(B, Lq, n_head, d_k).transpose(0, 2, 1, 3)
    kp = (k @ wk).reshape(B, Lk, n_head, d_k).transpose(0, 2, 1, 3)
    vp = (v @ wv).reshape(B, Lk, n_head, d_v).transpose(0, 2, 1, 3)
    attn = jnp.einsum("bhqd,bhkd->bhqk", qp / (d_k ** 0.5), kp)
    attn = jax.nn.softmax(attn, axis=-1)
    out = jnp.einsum("bhqk,bhkd->bhqd", attn, vp)
    out = out.transpose(0, 2, 1, 3).reshape(B, Lq, n_head * d_v)
    return out @ wfc


if __name__ == "__main__":
    # Small config consistent with the module: n_head=2, d_k=d_v=8 -> dim=16,
    # d_model=32, batch=2, seq=8.
    n_head, d_k, d_v, d_model = 2, 8, 8, 32
    dim_k, dim_v = n_head * d_k, n_head * d_v
    B, Lq, Lk = 2, 8, 8

    key = jax.random.PRNGKey(0)
    ks = jax.random.split(key, 7)
    q = jax.random.normal(ks[0], (B, Lq, dim_k), jnp.float32)
    k = jax.random.normal(ks[1], (B, Lk, dim_k), jnp.float32)
    v = jax.random.normal(ks[2], (B, Lk, dim_v), jnp.float32)
    # Deterministic parameter init (shapes from nn.Linear, stored transposed).
    wq = jax.random.normal(ks[3], (dim_k, dim_k), jnp.float32) * 0.1
    wk = jax.random.normal(ks[4], (dim_k, dim_k), jnp.float32) * 0.1
    wv = jax.random.normal(ks[5], (dim_v, dim_v), jnp.float32) * 0.1
    wfc = jax.random.normal(ks[6], (dim_v, d_model), jnp.float32) * 0.1

    out = multi_head_attention(q, k, v, wq, wk, wv, wfc,
                               n_head=n_head, d_k=d_k, d_v=d_v)
    out = jax.block_until_ready(out)

    ref = _reference(q, k, v, wq, wk, wv, wfc,
                     n_head=n_head, d_k=d_k, d_v=d_v)
    # bf16 MXU operands with f32 accumulation + approx reciprocal -> relaxed
    # tolerance vs. the pure-f32 reference.
    np.testing.assert_allclose(np.asarray(out), np.asarray(ref),
                               rtol=2e-2, atol=2e-2)
    print("KERNEL_OK")
</pallas_src>

<mosaic_0001>
module attributes {stable_mosaic.version = 11 : i64} {
  func.func @_mha_kernel(%arg0: i32, %arg1: i32, %arg2: memref<2x8x16xbf16, #tpu.memory_space<vmem>>, %arg3: memref<2x8x16xbf16, #tpu.memory_space<vmem>>, %arg4: memref<2x8x16xbf16, #tpu.memory_space<vmem>>, %arg5: memref<1x16x8xbf16, #tpu.memory_space<vmem>>, %arg6: memref<1x16x8xbf16, #tpu.memory_space<vmem>>, %arg7: memref<1x16x8xbf16, #tpu.memory_space<vmem>>, %arg8: memref<1x8x32xbf16, #tpu.memory_space<vmem>>, %arg9: memref<2x8x32xf32, #tpu.memory_space<vmem>>, %arg10: memref<16x32xf32, #tpu.memory_space<vmem>>) attributes {dimension_semantics = [#tpu.dimension_semantics<parallel>, #tpu.dimension_semantics<arbitrary>], iteration_bounds = array<i64: 1, 2>, scalar_prefetch = 0 : i64, scratch_operands = 1 : i64, tpu.core_type = #tpu.core_type<tc>, window_params = [{transform_indices = @transform_0, window_bounds = array<i64: 2, 8, 16>}, {transform_indices = @transform_1, window_bounds = array<i64: 2, 8, 16>}, {transform_indices = @transform_2, window_bounds = array<i64: 2, 8, 16>}, {transform_indices = @transform_3, window_bounds = array<i64: 1, 16, 8>}, {transform_indices = @transform_4, window_bounds = array<i64: 1, 16, 8>}, {transform_indices = @transform_5, window_bounds = array<i64: 1, 16, 8>}, {transform_indices = @transform_6, window_bounds = array<i64: 1, 8, 32>}, {transform_indices = @transform_7, window_bounds = array<i64: 2, 8, 32>}]} {
    %c0 = arith.constant 0 : index
    %c0_0 = arith.constant 0 : index
    %c0_1 = arith.constant 0 : index
    %0 = vector.load %arg2[%c0, %c0_0, %c0_1] : memref<2x8x16xbf16, #tpu.memory_space<vmem>>, vector<2x8x16xbf16>
    %1 = vector.shape_cast %0 : vector<2x8x16xbf16> to vector<16x16xbf16>
    %c0_2 = arith.constant 0 : index
    %c0_3 = arith.constant 0 : index
    %c0_4 = arith.constant 0 : index
    %2 = vector.load %arg3[%c0_2, %c0_3, %c0_4] : memref<2x8x16xbf16, #tpu.memory_space<vmem>>, vector<2x8x16xbf16>
    %3 = vector.shape_cast %2 : vector<2x8x16xbf16> to vector<16x16xbf16>
    %c0_5 = arith.constant 0 : index
    %c0_6 = arith.constant 0 : index
    %c0_7 = arith.constant 0 : index
    %4 = vector.load %arg4[%c0_5, %c0_6, %c0_7] : memref<2x8x16xbf16, #tpu.memory_space<vmem>>, vector<2x8x16xbf16>
    %5 = vector.shape_cast %4 : vector<2x8x16xbf16> to vector<16x16xbf16>
    %c0_8 = arith.constant 0 : index
    %c0_9 = arith.constant 0 : index
    %c0_10 = arith.constant 0 : index
    %6 = vector.load %arg5[%c0_8, %c0_9, %c0_10] : memref<1x16x8xbf16, #tpu.memory_space<vmem>>, vector<1x16x8xbf16>
    %7 = vector.shape_cast %6 : vector<1x16x8xbf16> to vector<16x8xbf16>
    %cst = arith.constant dense<0.000000e+00> : vector<16x8xf32>
    %8 = tpu.matmul %1, %7, %cst {dimension_numbers = #tpu.dot_dimension_numbers<[1], [0], [0], [1], [0, 0, 1, 1], [], []>} : vector<16x16xbf16>, vector<16x8xbf16>, vector<16x8xf32> -> vector<16x8xf32>
    %9 = arith.truncf %8 : vector<16x8xf32> to vector<16x8xbf16>
    %c0_11 = arith.constant 0 : index
    %c0_12 = arith.constant 0 : index
    %c0_13 = arith.constant 0 : index
    %10 = vector.load %arg6[%c0_11, %c0_12, %c0_13] : memref<1x16x8xbf16, #tpu.memory_space<vmem>>, vector<1x16x8xbf16>
    %11 = vector.shape_cast %10 : vector<1x16x8xbf16> to vector<16x8xbf16>
    %cst_14 = arith.constant dense<0.000000e+00> : vector<16x8xf32>
    %12 = tpu.matmul %3, %11, %cst_14 {dimension_numbers = #tpu.dot_dimension_numbers<[1], [0], [0], [1], [0, 0, 1, 1], [], []>} : vector<16x16xbf16>, vector<16x8xbf16>, vector<16x8xf32> -> vector<16x8xf32>
    %13 = arith.truncf %12 : vector<16x8xf32> to vector<16x8xbf16>
    %c0_15 = arith.constant 0 : index
    %c0_16 = arith.constant 0 : index
    %c0_17 = arith.constant 0 : index
    %14 = vector.load %arg7[%c0_15, %c0_16, %c0_17] : memref<1x16x8xbf16, #tpu.memory_space<vmem>>, vector<1x16x8xbf16>
    %15 = vector.shape_cast %14 : vector<1x16x8xbf16> to vector<16x8xbf16>
    %cst_18 = arith.constant dense<0.000000e+00> : vector<16x8xf32>
    %16 = tpu.matmul %5, %15, %cst_18 {dimension_numbers = #tpu.dot_dimension_numbers<[1], [0], [0], [1], [0, 0, 1, 1], [], []>} : vector<16x16xbf16>, vector<16x8xbf16>, vector<16x8xf32> -> vector<16x8xf32>
    %17 = arith.truncf %16 : vector<16x8xf32> to vector<16x8xbf16>
    %18 = vector.shape_cast %9 : vector<16x8xbf16> to vector<2x8x8xbf16>
    %19 = vector.shape_cast %13 : vector<16x8xbf16> to vector<2x8x8xbf16>
    %20 = vector.shape_cast %17 : vector<16x8xbf16> to vector<2x8x8xbf16>
    "tpu.trace_start"() <{level = 10 : i32, message = "bqd,bkd->bqk"}> : () -> ()
    %cst_19 = arith.constant dense<0.000000e+00> : vector<2x8x8xf32>
    %21 = tpu.matmul %18, %19, %cst_19 {dimension_numbers = #tpu.dot_dimension_numbers<[2], [2], [1], [1], [0, 0, 0, 1, 1, 1], [0], [0]>} : vector<2x8x8xbf16>, vector<2x8x8xbf16>, vector<2x8x8xf32> -> vector<2x8x8xf32>
    "tpu.trace_stop"() : () -> ()
    %cst_20 = arith.constant dense<0xFF800000> : vector<2x8xf32>
    %22 = vector.multi_reduction <maximumf>, %21, %cst_20 [2] : vector<2x8x8xf32> to vector<2x8xf32>
    %23 = vector.shape_cast %22 : vector<2x8xf32> to vector<2x8x1xf32>
    %24 = vector.broadcast %23 : vector<2x8x1xf32> to vector<2x8x8xf32>
    %25 = arith.subf %21, %24 : vector<2x8x8xf32>
    %26 = math.exp %25 : vector<2x8x8xf32>
    %cst_21 = arith.constant dense<0.000000e+00> : vector<2x8xf32>
    %27 = vector.multi_reduction <add>, %26, %cst_21 [2] : vector<2x8x8xf32> to vector<2x8xf32>
    %28 = vector.shape_cast %27 : vector<2x8xf32> to vector<2x8x1xf32>
    %29 = tpu.reciprocal %28 {approx = true} : vector<2x8x1xf32> -> vector<2x8x1xf32>
    %30 = vector.broadcast %29 : vector<2x8x1xf32> to vector<2x8x8xf32>
    %31 = arith.mulf %26, %30 : vector<2x8x8xf32>
    %32 = arith.truncf %31 : vector<2x8x8xf32> to vector<2x8x8xbf16>
    "tpu.trace_start"() <{level = 10 : i32, message = "bqk,bkd->bqd"}> : () -> ()
    %cst_22 = arith.constant dense<0.000000e+00> : vector<2x8x8xf32>
    %33 = tpu.matmul %32, %20, %cst_22 {dimension_numbers = #tpu.dot_dimension_numbers<[2], [1], [1], [2], [0, 0, 0, 1, 1, 2], [0], [0]>} : vector<2x8x8xbf16>, vector<2x8x8xbf16>, vector<2x8x8xf32> -> vector<2x8x8xf32>
    "tpu.trace_stop"() : () -> ()
    %34 = vector.shape_cast %33 : vector<2x8x8xf32> to vector<16x8xf32>
    %35 = arith.truncf %34 : vector<16x8xf32> to vector<16x8xbf16>
    %c0_23 = arith.constant 0 : index
    %c0_24 = arith.constant 0 : index
    %c0_25 = arith.constant 0 : index
    %36 = vector.load %arg8[%c0_23, %c0_24, %c0_25] : memref<1x8x32xbf16, #tpu.memory_space<vmem>>, vector<1x8x32xbf16>
    %37 = vector.shape_cast %36 : vector<1x8x32xbf16> to vector<8x32xbf16>
    %cst_26 = arith.constant dense<0.000000e+00> : vector<16x32xf32>
    %38 = tpu.matmul %35, %37, %cst_26 {dimension_numbers = #tpu.dot_dimension_numbers<[1], [0], [0], [1], [0, 0, 1, 1], [], []>} : vector<16x8xbf16>, vector<8x32xbf16>, vector<16x32xf32> -> vector<16x32xf32>
    %c0_i32 = arith.constant 0 : i32
    %39 = arith.cmpi eq, %arg1, %c0_i32 : i32
    %40 = arith.extui %39 : i1 to i32
    %c0_i32_27 = arith.constant 0 : i32
    %41 = arith.cmpi ne, %40, %c0_i32_27 : i32
    scf.if %41 {
      %cst_33 = arith.constant 0.000000e+00 : f32
      %48 = vector.broadcast %cst_33 : f32 to vector<16x32xf32>
      %c0_34 = arith.constant 0 : index
      %c0_35 = arith.constant 0 : index
      %49 = vector.load %arg10[%c0_34, %c0_35] : memref<16x32xf32, #tpu.memory_space<vmem>>, vector<16x32xf32>
      tpu.vector_store %arg10[%c0_34, %c0_35], %48 {strides = array<i32>} : memref<16x32xf32, #tpu.memory_space<vmem>>, vector<16x32xf32>,
    } else {
    }
    %c0_28 = arith.constant 0 : index
    %c0_29 = arith.constant 0 : index
    %42 = vector.load %arg10[%c0_28, %c0_29] : memref<16x32xf32, #tpu.memory_space<vmem>>, vector<16x32xf32>
    %43 = arith.addf %42, %38 : vector<16x32xf32>
    %c0_30 = arith.constant 0 : index
    %c0_31 = arith.constant 0 : index
    %44 = vector.load %arg10[%c0_30, %c0_31] : memref<16x32xf32, #tpu.memory_space<vmem>>, vector<16x32xf32>
    tpu.vector_store %arg10[%c0_30, %c0_31], %43 {strides = array<i32>} : memref<16x32xf32, #tpu.memory_space<vmem>>, vector<16x32xf32>,
    %c1_i32 = arith.constant 1 : i32
    %45 = arith.cmpi eq, %arg1, %c1_i32 : i32
    %46 = arith.extui %45 : i1 to i32
    %c0_i32_32 = arith.constant 0 : i32
    %47 = arith.cmpi ne, %46, %c0_i32_32 : i32
    scf.if %47 {
      %c0_33 = arith.constant 0 : index
      %c0_34 = arith.constant 0 : index
      %48 = vector.load %arg10[%c0_33, %c0_34] : memref<16x32xf32, #tpu.memory_space<vmem>>, vector<16x32xf32>
      %49 = vector.shape_cast %48 : vector<16x32xf32> to vector<2x8x32xf32>
      %c0_35 = arith.constant 0 : index
      %c0_36 = arith.constant 0 : index
      %c0_37 = arith.constant 0 : index
      %50 = vector.load %arg9[%c0_35, %c0_36, %c0_37] : memref<2x8x32xf32, #tpu.memory_space<vmem>>, vector<2x8x32xf32>
      tpu.vector_store %arg9[%c0_35, %c0_36, %c0_37], %49 {strides = array<i32>} : memref<2x8x32xf32, #tpu.memory_space<vmem>>, vector<2x8x32xf32>,
    } else {
    }
    return
  }
  func.func @transform_0(%arg0: i32, %arg1: i32) -> (i32, i32, i32) {
    %c0_i32 = arith.constant 0 : i32
    %c0_i32_0 = arith.constant 0 : i32
    %c0_i32_1 = arith.constant 0 : i32
    return %arg0, %c0_i32, %c0_i32_0 : i32, i32, i32
  }
  func.func @transform_1(%arg0: i32, %arg1: i32) -> (i32, i32, i32) {
    %c0_i32 = arith.constant 0 : i32
    %c0_i32_0 = arith.constant 0 : i32
    %c0_i32_1 = arith.constant 0 : i32
    return %arg0, %c0_i32, %c0_i32_0 : i32, i32, i32
  }
  func.func @transform_2(%arg0: i32, %arg1: i32) -> (i32, i32, i32) {
    %c0_i32 = arith.constant 0 : i32
    %c0_i32_0 = arith.constant 0 : i32
    %c0_i32_1 = arith.constant 0 : i32
    return %arg0, %c0_i32, %c0_i32_0 : i32, i32, i32
  }
  func.func @transform_3(%arg0: i32, %arg1: i32) -> (i32, i32, i32) {
    %c0_i32 = arith.constant 0 : i32
    %c0_i32_0 = arith.constant 0 : i32
    %c0_i32_1 = arith.constant 0 : i32
    return %arg1, %c0_i32, %c0_i32_0 : i32, i32, i32
  }
  func.func @transform_4(%arg0: i32, %arg1: i32) -> (i32, i32, i32) {
    %c0_i32 = arith.constant 0 : i32
    %c0_i32_0 = arith.constant 0 : i32
    %c0_i32_1 = arith.constant 0 : i32
    return %arg1, %c0_i32, %c0_i32_0 : i32, i32, i32
  }
  func.func @transform_5(%arg0: i32, %arg1: i32) -> (i32, i32, i32) {
    %c0_i32 = arith.constant 0 : i32
    %c0_i32_0 = arith.constant 0 : i32
    %c0_i32_1 = arith.constant 0 : i32
    return %arg1, %c0_i32, %c0_i32_0 : i32, i32, i32
  }
  func.func @transform_6(%arg0: i32, %arg1: i32) -> (i32, i32, i32) {
    %c0_i32 = arith.constant 0 : i32
    %c0_i32_0 = arith.constant 0 : i32
    %c0_i32_1 = arith.constant 0 : i32
    return %arg1, %c0_i32, %c0_i32_0 : i32, i32, i32
  }
  func.func @transform_7(%arg0: i32, %arg1: i32) -> (i32, i32, i32) {
    %c0_i32 = arith.constant 0 : i32
    %c0_i32_0 = arith.constant 0 : i32
    %c0_i32_1 = arith.constant 0 : i32
    return %arg0, %c0_i32, %c0_i32_0 : i32, i32, i32
  }
}

</mosaic_0001>

<bundles_post_ra>
// kernel: tpu_custom_call.1
= control target key start
LH: loop header
LB: loop body
LE: loop exit
PB: predicated region body
PF: predicated region fallthrough
CT: control target
= control target key end

     0   :  { %12 = vsyncpa [#allocation4], 0  ;;  %s1290_s24 = smov 0   ;;  %s1292_s25 = smov 0   ;;  %s1415_s0 = inlined_call_operand.vmem [shape: bf16[2,8,16], index: 0, kind: input, shape index: {}]   ;;  %s1416_s1 = inlined_call_operand.vmem [shape: bf16[2,8,16], index: 1, kind: input, shape index: {}]   ;;  %s1417_s2 = inlined_call_operand.vmem [shape: bf16[2,8,16], index: 2, kind: input, shape index: {}]   ;;  %s1418_s3 = inlined_call_operand.vmem [shape: bf16[2,16,8], index: 3, kind: input, shape index: {}]   ;;  %s1419_s4 = inlined_call_operand.vmem [shape: bf16[2,16,8], index: 4, kind: input, shape index: {}]   ;;  %s1420_s5 = inlined_call_operand.vmem [shape: bf16[2,16,8], index: 5, kind: input, shape index: {}]   ;;  %s1421_s6 = inlined_call_operand.vmem [shape: bf16[2,8,32], index: 6, kind: input, shape index: {}]   ;;  %s1422_s7 = inlined_call_operand.hbm [shape: f32[2,8,32], index: 7, kind: output, shape index: {}]  }
   0x1   :  { %s1294_s26 = smov 0  }
   0x2 LB: > { %s1027_s27 = sadd.s32 4294967295, %s1242_s26   ;;  %s27_s28 = sadd.s32 1, %s1238_s25  ;;  %s1242_s26 = sphi %s1294_s26, %s18_s26   ;;  %s1238_s25 = sphi %s1292_s25, %s1425_s25   ;;  %s1234_s24 = sphi %s1290_s24, %s1424_s24  }
   0x3   : > { %p28_p0 = scmp.ge.s32.totalorder %s27_s28, 2  ;;  %p1033_p1 = scmp.ge.s32.totalorder %s1242_s26, 1 }
   0x4   : > { %p312_p2 = scmp.lt.s32.totalorder %s1242_s26, 3 }
   0x5   : > { %s1427_s28 = smov (%p28_p0, %s27_s28), 0 }
   0x6   : > { %p313_p3 = pnand %p1033_p1, %p312_p2 }
   0x7   : > { %p386_p4 = scmp.lt.s32.totalorder (!%p313_p3), %s1234_s24, 1  ;;  %v1244_v0 = vmov (!%p313_p3), 0.0   ;;  %vm1245_vm0 = vmmov (!%p313_p3), 0   ;;  %v1177_v1 = vld [vmem:[%s1416_s1] sm:$0xff] (!%p313_p3)   ;;  %vm426_vm1 = vcmask (!%p313_p3), 130048   ;;  %vm603_vm2 = vcmask (!%p313_p3), 64512  }
   0x8   : > { %316 = sbr.rel (%p313_p3) target bundleno = 1244 (0x4dc), region = 48  ;;  %1098 = vmatprep.subr.bf16.mxu1 (!%p313_p3), %v1244_v0  ;;  %1100 = vmatprep.mubr.msk.bf16.mxu1 (!%p313_p3), %vm1245_vm0, %v1244_v0  ;;  %v1179_v4 = vld [vmem:[%s1415_s0] sm:$0xff] (!%p313_p3)   ;;  %vm723_vm3 = vcmask (!%p313_p3), 1043456   ;;  %p1061_p5 = scmp.ne.s32.totalorder (!%p313_p3), %s1234_s24, 0 }
   0x9   : > { %1092 = vmatprep.subr.bf16.mxu0 (!%p313_p3), %v1244_v0  ;;  %1094 = vmatprep.mubr.msk.bf16.mxu0 (!%p313_p3), %vm1245_vm0, %v1244_v0  ;;  %v1181_v6 = vld [vmem:[%s1417_s2] sm:$0xff] (!%p313_p3)  }
   0xf   : > { %s1316_s29 = scalar_select %p386_p4, %s1234_s24, 1 }
  0x10   : > { %vm866_vm4 = vcmask (!%p1061_p5), 261120  }
  0x11   : > { %s1067_s30 = sshll.u32 %s1316_s29, 3  ;;  %s1040_s23 = sshll.u32 %s1316_s29, 2 }
  0x12   : > { %s395_s10 = scalar_lea.vmem %s1419_s4, %s1067_s30  ;;  %s400_s15 = scalar_lea.vmem %s1420_s5, %s1067_s30 }
  0x13   : > { %v1176_v2 = vld [vmem:[%s395_s10] sm:$0xff]   ;;  %s390_s18 = scalar_lea.vmem %s1418_s3, %s1067_s30  ;;  %s404_s9 = scalar_lea.vmem %s1421_s6, %s1040_s23 }
  0x14   : > { %v1178_v3 = vld [vmem:[%s390_s18] sm:$0xff]   ;;  %1099 = vmatpush3.bf16.msra.mxu1 %v1176_v2 }
  0x15   : > { %1093 = vmatpush3.bf16.msra.mxu0 %v1178_v3  ;;  %v1180_v5 = vld [vmem:[%s400_s15] sm:$0xff]   ;;  %1110 = vmatprep.subr.bf16.mxu1 %v1244_v0 }
  0x16   : > { %1104 = vmatprep.subr.bf16.mxu0 %v1244_v0  ;;  %v814_v57 = vld [vmem:[%s404_s9] sm:$0xf] }
  0x17   : > { %1101 = vmatmul.mubr.msk.bf16.vlgmr.msra.gmra.mrb[0].mxu1 %vm426_vm1, %v1177_v1  ;;  %v819_v58 = vsel %vm723_vm3, %v814_v57, 0 }
  0x18   : > { %1095 = vmatmul.mubr.msk.bf16.vlgmr.msra.gmra.mrb[0].mxu0 %vm426_vm1, %v1179_v4  ;;  %1112 = vmatprep.mubr.msk.bf16.mxu1 %vm1245_vm0, %v1244_v0 }
  0x19   : > { %1105 = vmatpush3.bf16.msra.mxu0 %v1180_v5  ;;  %1106 = vmatprep.mubr.msk.bf16.mxu0 %vm1245_vm0, %v1244_v0 }
  0x1a   : > { %1116 = vmatprep.subr.bf16.mxu0 %v1244_v0 }
  0x20   : > { %1107 = vmatmul.mubr.msk.bf16.vlgmr.msra.gmra.mrb[4].mxu0 %vm426_vm1, %v1181_v6 }
  0x21   : > { %1118 = vmatprep.mubr.msk.bf16.mxu0 %vm1245_vm0, %v1244_v0 }
  0xea   : > { %v522_v7 = vpop.f32.mrb[0].mxu1 }
  0xeb   : > { %v1072_v8 = vpack.c.bf16 %v522_v7, %v522_v7  ;;  %v1102_v9 = vpop.f32.mrb[1].mxu1  ;;  %v464_v10 = vpop.f32.mrb[0].mxu0 }
  0xec   : > { %v525_v11 = vpop.f32.mrb[2].mxu1  ;;  %v1096_v12 = vpop.f32.mrb[1].mxu0  ;;  %v1070_v19 = vpack.c.bf16 %v464_v10, %v464_v10 }
  0xed   : > { %v608_v13 = vsel %vm603_vm2, %v1072_v8, 0  ;;  %v1073_v14 = vpack.c.bf16 %v525_v11, %v525_v11  ;;  %v1103_v15 = vpop.f32.mrb[3].mxu1  ;;  %v467_v16 = vpop.f32.mrb[2].mxu0  ;;  %v1246_v8 = vmov (!%p1061_p5), 0.0  }
  0xee   : > { %1111 = vmatpush3.bf16.xpose.msra.mxu1 %v608_v13  ;;  %v1097_v17 = vpop.f32.mrb[3].mxu0  ;;  %v1071_v20 = vpack.c.bf16 %v467_v16, %v467_v16  ;;  %867 = vst.msk [vmem:[#allocation2] sm:$0xff] (!%p1061_p5), %vm866_vm4, %v1246_v8  ;;  %868 = vst.msk [vmem:[#allocation2 + $0x8] sm:$0xff] (!%p1061_p5), %vm866_vm4, %v1246_v8 }
  0xef   : > { %v654_v18 = vsel %vm603_vm2, %v1073_v14, 0  ;;  %1122 = vmatprep.subr.bf16.mxu1 %v1244_v0 }
  0xf0   : > { %1117 = vmatpush3.bf16.xpose.msra.mxu0 %v654_v18 }
  0xf1   : > { %1128 = vmatprep.subr.bf16.mxu0 %v1244_v0 }
  0xf3   : > { %v580_v21 = vpop.f32.mrb[4].mxu0 }
  0xf4   : > { %v1074_v22 = vpack.c.bf16 %v580_v21, %v580_v21  ;;  %v1108_v23 = vpop.f32.mrb[5].mxu0 }
  0xf5   : > { %1113 = vmatmul.mubr.msk.bf16.vlgmr.msra.gmra.mrb[4].mxu1 %vm603_vm2, %v1070_v19  ;;  %v583_v24 = vpop.f32.mrb[6].mxu0 }
  0xf6   : > { %1124 = vmatprep.mubr.msk.bf16.mxu1 %vm1245_vm0, %v1244_v0  ;;  %v725_v25 = vsel %vm723_vm3, %v1074_v22, 0  ;;  %v1075_v26 = vpack.c.bf16 %v583_v24, %v583_v24  ;;  %v1109_v27 = vpop.f32.mrb[7].mxu0 }
  0xf7   : > { %1119 = vmatmul.mubr.msk.bf16.vlgmr.msra.gmra.mrb[8].mxu0 %vm603_vm2, %v1071_v20  ;;  %1123 = vmatpush3.bf16.msra.mxu1 %v725_v25 }
  0xf8   : > { %1130 = vmatprep.mubr.msk.bf16.mxu0 %vm1245_vm0, %v1244_v0  ;;  %v771_v28 = vsel %vm723_vm3, %v1075_v26, 0  ;;  %1134 = vmatprep.subr.bf16.mxu1 %v1244_v0 }
  0xf9   : > { %1129 = vmatpush3.bf16.msra.mxu0 %v771_v28 }
 0x1c8   : > { %v644_v29 = vpop.f32.mrb[4].mxu1 }
 0x1c9   : > { %v1114_v30 = vpop.f32.mrb[5].mxu1  ;;  %v696_v31 = vsel %vm603_vm2, %v644_v29, -inf }
 0x1ca   : > { %697 = vmax.xlane.f32.xlu0 %v696_v31  ;;  %v647_v32 = vpop.f32.mrb[6].mxu1  ;;  %v690_v33 = vpop.f32.mrb[8].mxu0 }
 0x1cb   : > { %v1115_v34 = vpop.f32.mrb[7].mxu1  ;;  %v1120_v35 = vpop.f32.mrb[9].mxu0  ;;  %v699_v38 = vsel %vm603_vm2, %v690_v33, -inf }
 0x1cc   : > { %v693_v36 = vpop.f32.mrb[10].mxu0 }
 0x1cd   : > { %v1121_v37 = vpop.f32.mrb[11].mxu0 }
 0x1ce   : > { %700 = vmax.xlane.f32.xlu0 %v699_v38 }
 0x257   : > { %v698_v39 = vpop.xlane.xlu0 %697 }
 0x258   : > { %v702_v40 = vsub.f32 %v644_v29, %v698_v39 }
 0x25a   : > { %v704_v41 = vmul.f32 1.442695, %v702_v40 }
 0x25b   : > { %v701_v42 = vpop.xlane.xlu0 %700 }
 0x25c   : > { %1182 = vpow2.f32 %v704_v41  ;;  %v703_v43 = vsub.f32 %v690_v33, %v701_v42 }
 0x25e   : > { %v706_v44 = vmul.f32 1.442695, %v703_v43 }
 0x260   : > { %1184 = vpow2.f32 %v706_v44 }
 0x266   : > { %v1183_v45 = vpop.eup %1182 }
 0x267   : > { %v708_v46 = vsel %vm603_vm2, %v1183_v45, 0.0 }
 0x268   : > { %709 = vadd.xlane.f32.xlu1 %v708_v46 }
 0x26a   : > { %v1185_v47 = vpop.eup %1184 }
 0x26b   : > { %v711_v48 = vsel %vm603_vm2, %v1185_v47, 0.0 }
 0x26c   : > { %712 = vadd.xlane.f32.xlu1 %v711_v48 }
 0x2f5   : > { %v710_v49 = vpop.xlane.xlu1 %709 }
 0x2f6   : > { %1186 = vrcp.f32 %v710_v49 }
 0x2f9   : > { %v713_v50 = vpop.xlane.xlu1 %712 }
 0x2fa   : > { %1188 = vrcp.f32 %v713_v50 }
 0x300   : > { %v1187_v51 = vpop.eup %1186 }
 0x301   : > { %v716_v52 = vmul.f32 %v1187_v51, %v1183_v45 }
 0x303   : > { %v718_v53 = vpack.c.bf16 %v716_v52, %v716_v52 }
 0x304   : > { %v1189_v54 = vpop.eup %1188 }
 0x305   : > { %v717_v55 = vmul.f32 %v1189_v54, %v1185_v47  ;;  %1125 = vmatmul.mubr.msk.bf16.vlgmr.msra.gmra.mrb[8].mxu1 %vm603_vm2, %v718_v53 }
 0x306   : > { %1136 = vmatprep.mubr.msk.bf16.mxu1 %vm1245_vm0, %v1244_v0  ;;  %1135 = vmatpush3.bf16.msra.mxu1 %v819_v58 }
 0x307   : > { %v719_v56 = vpack.c.bf16 %v717_v55, %v717_v55 }
 0x309   : > { %1131 = vmatmul.mubr.msk.bf16.vlgmr.msra.gmra.mrb[12].mxu0 %vm603_vm2, %v719_v56 }
 0x3d8   : > { %v761_v59 = vpop.f32.mrb[8].mxu1 }
 0x3d9   : > { %v1126_v60 = vpop.f32.mrb[9].mxu1 }
 0x3da   : > { %v764_v61 = vpop.f32.mrb[10].mxu1 }
 0x3db   : > { %v1127_v62 = vpop.f32.mrb[11].mxu1 }
 0x3dc   : > { %v807_v63 = vpop.f32.mrb[12].mxu0 }
 0x3dd   : > { %v813_v1 = vpack.c.bf16 %v807_v63, %v761_v59  ;;  %v1132_v2 = vpop.f32.mrb[13].mxu0 }
 0x3de   : > { %v810_v0 = vpop.f32.mrb[14].mxu0 }
 0x3df   : > { %v1133_v3 = vpop.f32.mrb[15].mxu0  ;;  %1137 = vmatmul.mubr.msk.bf16.vlgmr.msra.gmra.mrb[12].mxu1 %vm603_vm2, %v813_v1 }
 0x4af   : > { %865 = sbr.rel (%p1061_p5) target bundleno = 1206 (0x4b6), region = 52 }
 0x4b2   : > { %v855_v4 = vpop.f32.mrb[12].mxu1 }
 0x4b3   : > { %v1138_v5 = vpop.f32.mrb[13].mxu1 }
 0x4b4   : > { %v858_v6 = vpop.f32.mrb[14].mxu1 }
 0x4b5   : > { %v1139_v7 = vpop.f32.mrb[15].mxu1 }
 0x4b6 PF: > { %v869_v9 = vld [vmem:[#allocation2] sm:$0xff]  ;;  %vm873_vm5 = vcmask 261120   ;;  %v870_v10 = vld [vmem:[#allocation2 + $0x8] sm:$0xff]  ;;  %p1062_p6 = scmp.ne.s32.totalorder %s1234_s24, 1 }
 0x4b7   : > { %v871_v11 = vadd.f32 %v869_v9, %v855_v4  ;;  %v872_v12 = vadd.f32 %v870_v10, %v858_v6 }
 0x4b8   : > { %879 = sbr.rel (%p1062_p6) target bundleno = 1218 (0x4c2), region = 56 }
 0x4b9   : > { %874 = vst.msk [vmem:[#allocation2] sm:$0xff] %vm873_vm5, %v871_v11  ;;  %875 = vst.msk [vmem:[#allocation2 + $0x8] sm:$0xff] %vm873_vm5, %v872_v12 }
 0x4c0   : > { %v880_v13 = vld [vmem:[#allocation2] sm:$0xff]  ;;  %v881_v14 = vld [vmem:[#allocation2 + $0x8] sm:$0xff] }
 0x4c1   : > { %882 = vst.msk [vmem:[#allocation3] sm:$0xff] %vm873_vm5, %v880_v13  ;;  %883 = vst.msk [vmem:[#allocation3 + $0x8] sm:$0xff] %vm873_vm5, %v881_v14 }
 0x4c2 PF: > { %p1380_p7 = scmp.eq.s32.totalorder %s1027_s27, 1  ;;  %s1247_s10 = smov [#allocation3]  }
 0x4c3   : > { %s893_s11 = sshll.u32 %s1247_s10, 4  ;;  %s894_s11 = int_to_ptr.vmem [resolvable:$true] %s893_s11 }
 0x4c4   : > { %s1190_s12 = scalar_lea.vmem %s894_s11, 256  ;;  %p1197_p11 = scmp.lt.s32.totalorder %s894_s11, %s894_s11 }
 0x4c5   : > { %p1191_p8 = scmp.ne.s32.totalorder %s894_s11, %s1190_s12  ;;  %p1198_p12 = scmp.lt.s32.totalorder %s1190_s12, %s1190_s12 }
 0x4c7   : > { %p1192_p9 = pnand %p1191_p8, %p1380_p7  ;;  %p1199_p13 = por %p1198_p12, %p1197_p11 }
 0x4c9   : > { %p1193_p10 = pneg %p1192_p9 }
 0x4cb   : > { %p1200_p0 = pnand %p1199_p13, %p1193_p10 }
 0x4cd   : > { %1203 = shalt.err (!%p1200_p0)
}
 0x4ce   : > { %s1204_s27 = scalar_lea.hbm %s1422_s7, 256 }
 0x4cf   : > { %p1205_p1 = scmp.ne.s32.totalorder %s1422_s7, %s1204_s27  ;;  %p1210_p4 = scmp.lt.u32.totalorder %s1204_s27, %s1422_s7 }
 0x4d1   : > { %p1206_p2 = pnand %p1205_p1, %p1380_p7 }
 0x4d3   : > { %p1207_p3 = pneg %p1206_p2 }
 0x4d5   : > { %p1212_p5 = pnand %p1210_p4, %p1207_p3 }
 0x4d7   : > { %1215 = shalt.err (!%p1212_p5)
}
 0x4d8   : > { %s1248_s18 = smov 128   ;;  %s1249_s19 = smov 8  }
 0x4d9   : > { %1141 = dma.vmem_to_hbm [thread:$0]  (%p1380_p7), %s894_s11, 256, %s1422_s7, [#allocation4], %s1248_s18, %s1248_s18, %s1249_s19  }
 0x4da   : > { %1229 = dma.done.wait (%p1380_p7), [#allocation4], 256  }
 0x4db   : > { %1231 = vsyncadd (%p1380_p7), [#allocation4], 4294967040 }
 0x4dc PF: > { %s18_s26 = sadd.s32 1, %s1242_s26   ;;  %s1424_s24 = smov %s1238_s25 }
 0x4dd   : > { %p15_p6 = scmp.ge.s32.totalorder %s18_s26, 4   ;;  %s1425_s25 = smov %s1427_s28 }
 0x4df   :  { %17 = sbr.rel (!%p15_p6) target bundleno = 2 (0x2), region = 102 }
 0x4e6   :  { %909 = vsyncpa [#allocation4], 1 }
 0x4e7   :  { %911 = vsyncpa [#allocation4 + $0x1], 1 }

</bundles_post_ra>
